<compile_context>
chip_gen: v7x
topology: tpu7x:2x2x1
jax: 0.10.0
libtpu: 0.0.40
codegen_flags: <defaults>
</compile_context>

<pallas_src>
import functools

import numpy as np
import jax
import jax.numpy as jnp
from jax.experimental import pallas as pl
from jax.experimental.pallas import tpu as pltpu

WINDOW_SIZE = 11
SIGMA = 1.5
C1 = 0.01 ** 2
C2 = 0.03 ** 2


def _gaussian(window_size=WINDOW_SIZE, sigma=SIGMA):
    """Normalized 1D Gaussian taps, identical to SSIM.create_window's _gaussian."""
    x = np.arange(window_size, dtype=np.float64)
    g = np.exp(-((x - window_size // 2) ** 2) / (2.0 * sigma ** 2))
    return (g / g.sum()).astype(np.float32)


def _gaussian_toeplitz_right(n, window_size=WINDOW_SIZE, sigma=SIGMA):
    """Banded Toeplitz T (n, n) such that `x @ T` is the 1D "same" (zero-padded)
    Gaussian convolution of x along its last axis."""
    g = _gaussian(window_size, sigma)
    pad = window_size // 2
    t = np.zeros((n, n), dtype=np.float32)
    for j in range(n):
        for k in range(window_size):
            m = j + k - pad
            if 0 <= m < n:
                t[m, j] = g[k]          # T[m, j] = g[m - j + pad]
    return t


def create_window(window_size=WINDOW_SIZE, sigma=SIGMA):
    """2D Gaussian window (one channel slice), identical to SSIM.create_window."""
    g = _gaussian(window_size, sigma)
    return jnp.asarray(np.outer(g, g).astype(np.float32))


def _ssim_kernel(x1_ref, x2_ref, th_ref, tw_ref, out_ref, *, C):
    # x1_ref / x2_ref : VMEM (1, C, H, W) f32  (unpadded image planes)
    # th_ref          : VMEM (H, H) f32        (left Toeplitz, column conv)
    # tw_ref          : VMEM (W, W) f32        (right Toeplitz, row conv)
    # out_ref         : VMEM (1, 1, C) f32     (per-plane SSIM means)
    th = th_ref[...]
    tw = tw_ref[...]

    def gconv(m):
        # Separable "same" Gaussian conv as two MXU matmuls: T_h @ (m @ T_w).
        mw = jnp.dot(m, tw, preferred_element_type=jnp.float32)
        return jnp.dot(th, mw, preferred_element_type=jnp.float32)

    for c in range(C):                       # C is small & static: unrolled
        a = x1_ref[0, c]                     # (H, W)
        b = x2_ref[0, c]

        mu1 = gconv(a)
        mu2 = gconv(b)
        e11 = gconv(a * a)
        e22 = gconv(b * b)
        e12 = gconv(a * b)

        mu1_sq = mu1 * mu1
        mu2_sq = mu2 * mu2
        mu1_mu2 = mu1 * mu2
        sigma1_sq = e11 - mu1_sq
        sigma2_sq = e22 - mu2_sq
        sigma12 = e12 - mu1_mu2

        ssim_map = ((2.0 * mu1_mu2 + C1) * (2.0 * sigma12 + C2)) / (
            (mu1_sq + mu2_sq + C1) * (sigma1_sq + sigma2_sq + C2))

        out_ref[0:1, 0:1, c:c + 1] = jnp.mean(ssim_map).reshape(1, 1, 1)


def ssim(img1, img2, *, window_size=WINDOW_SIZE, size_average=True):
    """Pallas SSIM, semantics of SSIM.forward (NCHW inputs, float32)."""
    if img1.ndim == 3:
        img1 = img1[None]
    if img2.ndim == 3:
        img2 = img2[None]
    img1 = img1.astype(jnp.float32)
    img2 = img2.astype(jnp.float32)

    B, C, H, W = img1.shape

    # Banded Toeplitz matrices encoding the zero-padded separable Gaussian conv.
    t_w = jnp.asarray(_gaussian_toeplitz_right(W, window_size))      # right mult
    t_h = jnp.asarray(_gaussian_toeplitz_right(H, window_size).T)    # left mult

    kernel = functools.partial(_ssim_kernel, C=C)

    per_plane = pl.pallas_call(
        kernel,
        out_shape=jax.ShapeDtypeStruct((B, 1, C), jnp.float32),
        grid_spec=pltpu.PrefetchScalarGridSpec(
            num_scalar_prefetch=0,
            grid=(B,),
            in_specs=[
                pl.BlockSpec((1, C, H, W), lambda b: (b, 0, 0, 0)),
                pl.BlockSpec((1, C, H, W), lambda b: (b, 0, 0, 0)),
                pl.BlockSpec((H, H), lambda b: (0, 0)),   # resident across grid
                pl.BlockSpec((W, W), lambda b: (0, 0)),   # resident across grid
            ],
            out_specs=pl.BlockSpec((1, 1, C), lambda b: (b, 0, 0)),
        ),
        compiler_params=pltpu.CompilerParams(
            dimension_semantics=("parallel",)),
    )(img1, img2, t_h, t_w)

    per_plane = per_plane[:, 0, :]              # (B, C) per-plane means
    if size_average:
        return per_plane.mean()                 # scalar == ssim_map.mean()
    else:
        return per_plane.mean(axis=1)           # (B,) == mean(1).mean(1).mean(1)


def _ssim_reference(img1, img2, *, window_size=WINDOW_SIZE, size_average=True):
    """Pure-JAX reference (depthwise conv via lax.conv) for verification."""
    B, C, H, W = img1.shape
    w2d = create_window(window_size)
    wgt = jnp.broadcast_to(w2d, (C, 1, window_size, window_size))
    conv = lambda x: jax.lax.conv_general_dilated(
        x, wgt, window_strides=(1, 1), padding="SAME",
        dimension_numbers=("NCHW", "OIHW", "NCHW"), feature_group_count=C)
    mu1, mu2 = conv(img1), conv(img2)
    mu1_sq, mu2_sq, mu1_mu2 = mu1 * mu1, mu2 * mu2, mu1 * mu2
    sigma1_sq = conv(img1 * img1) - mu1_sq
    sigma2_sq = conv(img2 * img2) - mu2_sq
    sigma12 = conv(img1 * img2) - mu1_mu2
    ssim_map = ((2 * mu1_mu2 + C1) * (2 * sigma12 + C2)) / (
        (mu1_sq + mu2_sq + C1) * (sigma1_sq + sigma2_sq + C2))
    if size_average:
        return ssim_map.mean()
    return ssim_map.mean(axis=(1, 2, 3))


if __name__ == "__main__":
    key = jax.random.PRNGKey(0)
    k1, k2 = jax.random.split(key)
    B, C, H, W = 2, 3, 16, 16                   # channel=3 matches module default
    img1 = jax.random.uniform(k1, (B, C, H, W), dtype=jnp.float32)
    img2 = jax.random.uniform(k2, (B, C, H, W), dtype=jnp.float32)

    out = jax.block_until_ready(ssim(img1, img2, size_average=True))
    out_nb = jax.block_until_ready(ssim(img1, img2, size_average=False))

    ref = _ssim_reference(img1, img2, size_average=True)
    ref_nb = _ssim_reference(img1, img2, size_average=False)
    np.testing.assert_allclose(np.asarray(out), np.asarray(ref), rtol=1e-5, atol=1e-5)
    np.testing.assert_allclose(np.asarray(out_nb), np.asarray(ref_nb), rtol=1e-5, atol=1e-5)

    print("KERNEL_OK")
</pallas_src>

<mosaic_0001>
module attributes {stable_mosaic.version = 11 : i64} {
  func.func @_ssim_kernel(%arg0: i32, %arg1: memref<1x3x16x16xf32, #tpu.memory_space<vmem>>, %arg2: memref<1x3x16x16xf32, #tpu.memory_space<vmem>>, %arg3: memref<16x16xf32, #tpu.memory_space<vmem>>, %arg4: memref<16x16xf32, #tpu.memory_space<vmem>>, %arg5: memref<1x1x3xf32, #tpu.memory_space<vmem>>) attributes {dimension_semantics = [#tpu.dimension_semantics<parallel>], iteration_bounds = array<i64: 2>, scalar_prefetch = 0 : i64, scratch_operands = 0 : i64, tpu.core_type = #tpu.core_type<tc>, window_params = [{transform_indices = @transform_0, window_bounds = array<i64: 1, 3, 16, 16>}, {transform_indices = @transform_1, window_bounds = array<i64: 1, 3, 16, 16>}, {pipeline_mode = #tpu.pipeline_mode<synchronous>, transform_indices = @transform_2, window_bounds = array<i64: 16, 16>}, {pipeline_mode = #tpu.pipeline_mode<synchronous>, transform_indices = @transform_3, window_bounds = array<i64: 16, 16>}, {transform_indices = @transform_4, window_bounds = array<i64: 1, 1, 3>}]} {
    %c0 = arith.constant 0 : index
    %c0_0 = arith.constant 0 : index
    %0 = vector.load %arg3[%c0, %c0_0] : memref<16x16xf32, #tpu.memory_space<vmem>>, vector<16x16xf32>
    %c0_1 = arith.constant 0 : index
    %c0_2 = arith.constant 0 : index
    %1 = vector.load %arg4[%c0_1, %c0_2] : memref<16x16xf32, #tpu.memory_space<vmem>>, vector<16x16xf32>
    %c0_3 = arith.constant 0 : index
    %c0_4 = arith.constant 0 : index
    %c0_5 = arith.constant 0 : index
    %c0_6 = arith.constant 0 : index
    %2 = vector.load %arg1[%c0_3, %c0_4, %c0_5, %c0_6] : memref<1x3x16x16xf32, #tpu.memory_space<vmem>>, vector<1x1x16x16xf32>
    %3 = vector.shape_cast %2 : vector<1x1x16x16xf32> to vector<16x16xf32>
    %c0_7 = arith.constant 0 : index
    %c0_8 = arith.constant 0 : index
    %c0_9 = arith.constant 0 : index
    %c0_10 = arith.constant 0 : index
    %4 = vector.load %arg2[%c0_7, %c0_8, %c0_9, %c0_10] : memref<1x3x16x16xf32, #tpu.memory_space<vmem>>, vector<1x1x16x16xf32>
    %5 = vector.shape_cast %4 : vector<1x1x16x16xf32> to vector<16x16xf32>
    %cst = arith.constant dense<0.000000e+00> : vector<16x16xf32>
    %6 = tpu.matmul %3, %1, %cst {dimension_numbers = #tpu.dot_dimension_numbers<[1], [0], [0], [1], [0, 0, 1, 1], [], []>} : vector<16x16xf32>, vector<16x16xf32>, vector<16x16xf32> -> vector<16x16xf32>
    %cst_11 = arith.constant dense<0.000000e+00> : vector<16x16xf32>
    %7 = tpu.matmul %0, %6, %cst_11 {dimension_numbers = #tpu.dot_dimension_numbers<[1], [0], [0], [1], [0, 0, 1, 1], [], []>} : vector<16x16xf32>, vector<16x16xf32>, vector<16x16xf32> -> vector<16x16xf32>
    %cst_12 = arith.constant dense<0.000000e+00> : vector<16x16xf32>
    %8 = tpu.matmul %5, %1, %cst_12 {dimension_numbers = #tpu.dot_dimension_numbers<[1], [0], [0], [1], [0, 0, 1, 1], [], []>} : vector<16x16xf32>, vector<16x16xf32>, vector<16x16xf32> -> vector<16x16xf32>
    %cst_13 = arith.constant dense<0.000000e+00> : vector<16x16xf32>
    %9 = tpu.matmul %0, %8, %cst_13 {dimension_numbers = #tpu.dot_dimension_numbers<[1], [0], [0], [1], [0, 0, 1, 1], [], []>} : vector<16x16xf32>, vector<16x16xf32>, vector<16x16xf32> -> vector<16x16xf32>
    %10 = arith.mulf %3, %3 : vector<16x16xf32>
    %cst_14 = arith.constant dense<0.000000e+00> : vector<16x16xf32>
    %11 = tpu.matmul %10, %1, %cst_14 {dimension_numbers = #tpu.dot_dimension_numbers<[1], [0], [0], [1], [0, 0, 1, 1], [], []>} : vector<16x16xf32>, vector<16x16xf32>, vector<16x16xf32> -> vector<16x16xf32>
    %cst_15 = arith.constant dense<0.000000e+00> : vector<16x16xf32>
    %12 = tpu.matmul %0, %11, %cst_15 {dimension_numbers = #tpu.dot_dimension_numbers<[1], [0], [0], [1], [0, 0, 1, 1], [], []>} : vector<16x16xf32>, vector<16x16xf32>, vector<16x16xf32> -> vector<16x16xf32>
    %13 = arith.mulf %5, %5 : vector<16x16xf32>
    %cst_16 = arith.constant dense<0.000000e+00> : vector<16x16xf32>
    %14 = tpu.matmul %13, %1, %cst_16 {dimension_numbers = #tpu.dot_dimension_numbers<[1], [0], [0], [1], [0, 0, 1, 1], [], []>} : vector<16x16xf32>, vector<16x16xf32>, vector<16x16xf32> -> vector<16x16xf32>
    %cst_17 = arith.constant dense<0.000000e+00> : vector<16x16xf32>
    %15 = tpu.matmul %0, %14, %cst_17 {dimension_numbers = #tpu.dot_dimension_numbers<[1], [0], [0], [1], [0, 0, 1, 1], [], []>} : vector<16x16xf32>, vector<16x16xf32>, vector<16x16xf32> -> vector<16x16xf32>
    %16 = arith.mulf %3, %5 : vector<16x16xf32>
    %cst_18 = arith.constant dense<0.000000e+00> : vector<16x16xf32>
    %17 = tpu.matmul %16, %1, %cst_18 {dimension_numbers = #tpu.dot_dimension_numbers<[1], [0], [0], [1], [0, 0, 1, 1], [], []>} : vector<16x16xf32>, vector<16x16xf32>, vector<16x16xf32> -> vector<16x16xf32>
    %cst_19 = arith.constant dense<0.000000e+00> : vector<16x16xf32>
    %18 = tpu.matmul %0, %17, %cst_19 {dimension_numbers = #tpu.dot_dimension_numbers<[1], [0], [0], [1], [0, 0, 1, 1], [], []>} : vector<16x16xf32>, vector<16x16xf32>, vector<16x16xf32> -> vector<16x16xf32>
    %19 = arith.mulf %7, %7 : vector<16x16xf32>
    %20 = arith.mulf %9, %9 : vector<16x16xf32>
    %21 = arith.mulf %7, %9 : vector<16x16xf32>
    %22 = arith.subf %12, %19 : vector<16x16xf32>
    %23 = arith.subf %15, %20 : vector<16x16xf32>
    %24 = arith.subf %18, %21 : vector<16x16xf32>
    %cst_20 = arith.constant 2.000000e+00 : f32
    %25 = vector.broadcast %cst_20 : f32 to vector<16x16xf32>
    %26 = arith.mulf %25, %21 : vector<16x16xf32>
    %cst_21 = arith.constant 9.99999974E-5 : f32
    %27 = vector.broadcast %cst_21 : f32 to vector<16x16xf32>
    %28 = arith.addf %26, %27 : vector<16x16xf32>
    %cst_22 = arith.constant 2.000000e+00 : f32
    %29 = vector.broadcast %cst_22 : f32 to vector<16x16xf32>
    %30 = arith.mulf %29, %24 : vector<16x16xf32>
    %cst_23 = arith.constant 8.99999984E-4 : f32
    %31 = vector.broadcast %cst_23 : f32 to vector<16x16xf32>
    %32 = arith.addf %30, %31 : vector<16x16xf32>
    %33 = arith.mulf %28, %32 : vector<16x16xf32>
    %34 = arith.addf %19, %20 : vector<16x16xf32>
    %cst_24 = arith.constant 9.99999974E-5 : f32
    %35 = vector.broadcast %cst_24 : f32 to vector<16x16xf32>
    %36 = arith.addf %34, %35 : vector<16x16xf32>
    %37 = arith.addf %22, %23 : vector<16x16xf32>
    %cst_25 = arith.constant 8.99999984E-4 : f32
    %38 = vector.broadcast %cst_25 : f32 to vector<16x16xf32>
    %39 = arith.addf %37, %38 : vector<16x16xf32>
    %40 = arith.mulf %36, %39 : vector<16x16xf32>
    %41 = arith.divf %33, %40 : vector<16x16xf32>
    %42 = vector.shape_cast %41 : vector<16x16xf32> to vector<1x16x16xf32>
    %cst_26 = arith.constant dense<0.000000e+00> : vector<1xf32>
    %43 = vector.multi_reduction <add>, %42, %cst_26 [1, 2] : vector<1x16x16xf32> to vector<1xf32>
    %44 = vector.shape_cast %43 : vector<1xf32> to vector<1x1x1xf32>
    %45 = vector.extract %44[0, 0, 0] : f32 from vector<1x1x1xf32>
    %cst_27 = arith.constant 2.560000e+02 : f32
    %46 = arith.divf %45, %cst_27 : f32
    %47 = vector.broadcast %46 : f32 to vector<1x1x1xf32>
    %c0_28 = arith.constant 0 : index
    %c0_29 = arith.constant 0 : index
    %c0_30 = arith.constant 0 : index
    %48 = vector.load %arg5[%c0_28, %c0_29, %c0_30] : memref<1x1x3xf32, #tpu.memory_space<vmem>>, vector<1x1x1xf32>
    tpu.vector_store %arg5[%c0_28, %c0_29, %c0_30], %47 {strides = array<i32>} : memref<1x1x3xf32, #tpu.memory_space<vmem>>, vector<1x1x1xf32>,
    %c0_31 = arith.constant 0 : index
    %c1 = arith.constant 1 : index
    %c0_32 = arith.constant 0 : index
    %c0_33 = arith.constant 0 : index
    %49 = vector.load %arg1[%c0_31, %c1, %c0_32, %c0_33] : memref<1x3x16x16xf32, #tpu.memory_space<vmem>>, vector<1x1x16x16xf32>
    %50 = vector.shape_cast %49 : vector<1x1x16x16xf32> to vector<16x16xf32>
    %c0_34 = arith.constant 0 : index
    %c1_35 = arith.constant 1 : index
    %c0_36 = arith.constant 0 : index
    %c0_37 = arith.constant 0 : index
    %51 = vector.load %arg2[%c0_34, %c1_35, %c0_36, %c0_37] : memref<1x3x16x16xf32, #tpu.memory_space<vmem>>, vector<1x1x16x16xf32>
    %52 = vector.shape_cast %51 : vector<1x1x16x16xf32> to vector<16x16xf32>
    %cst_38 = arith.constant dense<0.000000e+00> : vector<16x16xf32>
    %53 = tpu.matmul %50, %1, %cst_38 {dimension_numbers = #tpu.dot_dimension_numbers<[1], [0], [0], [1], [0, 0, 1, 1], [], []>} : vector<16x16xf32>, vector<16x16xf32>, vector<16x16xf32> -> vector<16x16xf32>
    %cst_39 = arith.constant dense<0.000000e+00> : vector<16x16xf32>
    %54 = tpu.matmul %0, %53, %cst_39 {dimension_numbers = #tpu.dot_dimension_numbers<[1], [0], [0], [1], [0, 0, 1, 1], [], []>} : vector<16x16xf32>, vector<16x16xf32>, vector<16x16xf32> -> vector<16x16xf32>
    %cst_40 = arith.constant dense<0.000000e+00> : vector<16x16xf32>
    %55 = tpu.matmul %52, %1, %cst_40 {dimension_numbers = #tpu.dot_dimension_numbers<[1], [0], [0], [1], [0, 0, 1, 1], [], []>} : vector<16x16xf32>, vector<16x16xf32>, vector<16x16xf32> -> vector<16x16xf32>
    %cst_41 = arith.constant dense<0.000000e+00> : vector<16x16xf32>
    %56 = tpu.matmul %0, %55, %cst_41 {dimension_numbers = #tpu.dot_dimension_numbers<[1], [0], [0], [1], [0, 0, 1, 1], [], []>} : vector<16x16xf32>, vector<16x16xf32>, vector<16x16xf32> -> vector<16x16xf32>
    %57 = arith.mulf %50, %50 : vector<16x16xf32>
    %cst_42 = arith.constant dense<0.000000e+00> : vector<16x16xf32>
    %58 = tpu.matmul %57, %1, %cst_42 {dimension_numbers = #tpu.dot_dimension_numbers<[1], [0], [0], [1], [0, 0, 1, 1], [], []>} : vector<16x16xf32>, vector<16x16xf32>, vector<16x16xf32> -> vector<16x16xf32>
    %cst_43 = arith.constant dense<0.000000e+00> : vector<16x16xf32>
    %59 = tpu.matmul %0, %58, %cst_43 {dimension_numbers = #tpu.dot_dimension_numbers<[1], [0], [0], [1], [0, 0, 1, 1], [], []>} : vector<16x16xf32>, vector<16x16xf32>, vector<16x16xf32> -> vector<16x16xf32>
    %60 = arith.mulf %52, %52 : vector<16x16xf32>
    %cst_44 = arith.constant dense<0.000000e+00> : vector<16x16xf32>
    %61 = tpu.matmul %60, %1, %cst_44 {dimension_numbers = #tpu.dot_dimension_numbers<[1], [0], [0], [1], [0, 0, 1, 1], [], []>} : vector<16x16xf32>, vector<16x16xf32>, vector<16x16xf32> -> vector<16x16xf32>
    %cst_45 = arith.constant dense<0.000000e+00> : vector<16x16xf32>
    %62 = tpu.matmul %0, %61, %cst_45 {dimension_numbers = #tpu.dot_dimension_numbers<[1], [0], [0], [1], [0, 0, 1, 1], [], []>} : vector<16x16xf32>, vector<16x16xf32>, vector<16x16xf32> -> vector<16x16xf32>
    %63 = arith.mulf %50, %52 : vector<16x16xf32>
    %cst_46 = arith.constant dense<0.000000e+00> : vector<16x16xf32>
    %64 = tpu.matmul %63, %1, %cst_46 {dimension_numbers = #tpu.dot_dimension_numbers<[1], [0], [0], [1], [0, 0, 1, 1], [], []>} : vector<16x16xf32>, vector<16x16xf32>, vector<16x16xf32> -> vector<16x16xf32>
    %cst_47 = arith.constant dense<0.000000e+00> : vector<16x16xf32>
    %65 = tpu.matmul %0, %64, %cst_47 {dimension_numbers = #tpu.dot_dimension_numbers<[1], [0], [0], [1], [0, 0, 1, 1], [], []>} : vector<16x16xf32>, vector<16x16xf32>, vector<16x16xf32> -> vector<16x16xf32>
    %66 = arith.mulf %54, %54 : vector<16x16xf32>
    %67 = arith.mulf %56, %56 : vector<16x16xf32>
    %68 = arith.mulf %54, %56 : vector<16x16xf32>
    %69 = arith.subf %59, %66 : vector<16x16xf32>
    %70 = arith.subf %62, %67 : vector<16x16xf32>
    %71 = arith.subf %65, %68 : vector<16x16xf32>
    %cst_48 = arith.constant 2.000000e+00 : f32
    %72 = vector.broadcast %cst_48 : f32 to vector<16x16xf32>
    %73 = arith.mulf %72, %68 : vector<16x16xf32>
    %cst_49 = arith.constant 9.99999974E-5 : f32
    %74 = vector.broadcast %cst_49 : f32 to vector<16x16xf32>
    %75 = arith.addf %73, %74 : vector<16x16xf32>
    %cst_50 = arith.constant 2.000000e+00 : f32
    %76 = vector.broadcast %cst_50 : f32 to vector<16x16xf32>
    %77 = arith.mulf %76, %71 : vector<16x16xf32>
    %cst_51 = arith.constant 8.99999984E-4 : f32
    %78 = vector.broadcast %cst_51 : f32 to vector<16x16xf32>
    %79 = arith.addf %77, %78 : vector<16x16xf32>
    %80 = arith.mulf %75, %79 : vector<16x16xf32>
    %81 = arith.addf %66, %67 : vector<16x16xf32>
    %cst_52 = arith.constant 9.99999974E-5 : f32
    %82 = vector.broadcast %cst_52 : f32 to vector<16x16xf32>
    %83 = arith.addf %81, %82 : vector<16x16xf32>
    %84 = arith.addf %69, %70 : vector<16x16xf32>
    %cst_53 = arith.constant 8.99999984E-4 : f32
    %85 = vector.broadcast %cst_53 : f32 to vector<16x16xf32>
    %86 = arith.addf %84, %85 : vector<16x16xf32>
    %87 = arith.mulf %83, %86 : vector<16x16xf32>
    %88 = arith.divf %80, %87 : vector<16x16xf32>
    %89 = vector.shape_cast %88 : vector<16x16xf32> to vector<1x16x16xf32>
    %cst_54 = arith.constant dense<0.000000e+00> : vector<1xf32>
    %90 = vector.multi_reduction <add>, %89, %cst_54 [1, 2] : vector<1x16x16xf32> to vector<1xf32>
    %91 = vector.shape_cast %90 : vector<1xf32> to vector<1x1x1xf32>
    %92 = vector.extract %91[0, 0, 0] : f32 from vector<1x1x1xf32>
    %cst_55 = arith.constant 2.560000e+02 : f32
    %93 = arith.divf %92, %cst_55 : f32
    %94 = vector.broadcast %93 : f32 to vector<1x1x1xf32>
    %c0_56 = arith.constant 0 : index
    %c0_57 = arith.constant 0 : index
    %c1_58 = arith.constant 1 : index
    %95 = vector.load %arg5[%c0_56, %c0_57, %c1_58] : memref<1x1x3xf32, #tpu.memory_space<vmem>>, vector<1x1x1xf32>
    tpu.vector_store %arg5[%c0_56, %c0_57, %c1_58], %94 {strides = array<i32>} : memref<1x1x3xf32, #tpu.memory_space<vmem>>, vector<1x1x1xf32>,
    %c0_59 = arith.constant 0 : index
    %c2 = arith.constant 2 : index
    %c0_60 = arith.constant 0 : index
    %c0_61 = arith.constant 0 : index
    %96 = vector.load %arg1[%c0_59, %c2, %c0_60, %c0_61] : memref<1x3x16x16xf32, #tpu.memory_space<vmem>>, vector<1x1x16x16xf32>
    %97 = vector.shape_cast %96 : vector<1x1x16x16xf32> to vector<16x16xf32>
    %c0_62 = arith.constant 0 : index
    %c2_63 = arith.constant 2 : index
    %c0_64 = arith.constant 0 : index
    %c0_65 = arith.constant 0 : index
    %98 = vector.load %arg2[%c0_62, %c2_63, %c0_64, %c0_65] : memref<1x3x16x16xf32, #tpu.memory_space<vmem>>, vector<1x1x16x16xf32>
    %99 = vector.shape_cast %98 : vector<1x1x16x16xf32> to vector<16x16xf32>
    %cst_66 = arith.constant dense<0.000000e+00> : vector<16x16xf32>
    %100 = tpu.matmul %97, %1, %cst_66 {dimension_numbers = #tpu.dot_dimension_numbers<[1], [0], [0], [1], [0, 0, 1, 1], [], []>} : vector<16x16xf32>, vector<16x16xf32>, vector<16x16xf32> -> vector<16x16xf32>
    %cst_67 = arith.constant dense<0.000000e+00> : vector<16x16xf32>
    %101 = tpu.matmul %0, %100, %cst_67 {dimension_numbers = #tpu.dot_dimension_numbers<[1], [0], [0], [1], [0, 0, 1, 1], [], []>} : vector<16x16xf32>, vector<16x16xf32>, vector<16x16xf32> -> vector<16x16xf32>
    %cst_68 = arith.constant dense<0.000000e+00> : vector<16x16xf32>
    %102 = tpu.matmul %99, %1, %cst_68 {dimension_numbers = #tpu.dot_dimension_numbers<[1], [0], [0], [1], [0, 0, 1, 1], [], []>} : vector<16x16xf32>, vector<16x16xf32>, vector<16x16xf32> -> vector<16x16xf32>
    %cst_69 = arith.constant dense<0.000000e+00> : vector<16x16xf32>
    %103 = tpu.matmul %0, %102, %cst_69 {dimension_numbers = #tpu.dot_dimension_numbers<[1], [0], [0], [1], [0, 0, 1, 1], [], []>} : vector<16x16xf32>, vector<16x16xf32>, vector<16x16xf32> -> vector<16x16xf32>
    %104 = arith.mulf %97, %97 : vector<16x16xf32>
    %cst_70 = arith.constant dense<0.000000e+00> : vector<16x16xf32>
    %105 = tpu.matmul %104, %1, %cst_70 {dimension_numbers = #tpu.dot_dimension_numbers<[1], [0], [0], [1], [0, 0, 1, 1], [], []>} : vector<16x16xf32>, vector<16x16xf32>, vector<16x16xf32> -> vector<16x16xf32>
    %cst_71 = arith.constant dense<0.000000e+00> : vector<16x16xf32>
    %106 = tpu.matmul %0, %105, %cst_71 {dimension_numbers = #tpu.dot_dimension_numbers<[1], [0], [0], [1], [0, 0, 1, 1], [], []>} : vector<16x16xf32>, vector<16x16xf32>, vector<16x16xf32> -> vector<16x16xf32>
    %107 = arith.mulf %99, %99 : vector<16x16xf32>
    %cst_72 = arith.constant dense<0.000000e+00> : vector<16x16xf32>
    %108 = tpu.matmul %107, %1, %cst_72 {dimension_numbers = #tpu.dot_dimension_numbers<[1], [0], [0], [1], [0, 0, 1, 1], [], []>} : vector<16x16xf32>, vector<16x16xf32>, vector<16x16xf32> -> vector<16x16xf32>
    %cst_73 = arith.constant dense<0.000000e+00> : vector<16x16xf32>
    %109 = tpu.matmul %0, %108, %cst_73 {dimension_numbers = #tpu.dot_dimension_numbers<[1], [0], [0], [1], [0, 0, 1, 1], [], []>} : vector<16x16xf32>, vector<16x16xf32>, vector<16x16xf32> -> vector<16x16xf32>
    %110 = arith.mulf %97, %99 : vector<16x16xf32>
    %cst_74 = arith.constant dense<0.000000e+00> : vector<16x16xf32>
    %111 = tpu.matmul %110, %1, %cst_74 {dimension_numbers = #tpu.dot_dimension_numbers<[1], [0], [0], [1], [0, 0, 1, 1], [], []>} : vector<16x16xf32>, vector<16x16xf32>, vector<16x16xf32> -> vector<16x16xf32>
    %cst_75 = arith.constant dense<0.000000e+00> : vector<16x16xf32>
    %112 = tpu.matmul %0, %111, %cst_75 {dimension_numbers = #tpu.dot_dimension_numbers<[1], [0], [0], [1], [0, 0, 1, 1], [], []>} : vector<16x16xf32>, vector<16x16xf32>, vector<16x16xf32> -> vector<16x16xf32>
    %113 = arith.mulf %101, %101 : vector<16x16xf32>
    %114 = arith.mulf %103, %103 : vector<16x16xf32>
    %115 = arith.mulf %101, %103 : vector<16x16xf32>
    %116 = arith.subf %106, %113 : vector<16x16xf32>
    %117 = arith.subf %109, %114 : vector<16x16xf32>
    %118 = arith.subf %112, %115 : vector<16x16xf32>
    %cst_76 = arith.constant 2.000000e+00 : f32
    %119 = vector.broadcast %cst_76 : f32 to vector<16x16xf32>
    %120 = arith.mulf %119, %115 : vector<16x16xf32>
    %cst_77 = arith.constant 9.99999974E-5 : f32
    %121 = vector.broadcast %cst_77 : f32 to vector<16x16xf32>
    %122 = arith.addf %120, %121 : vector<16x16xf32>
    %cst_78 = arith.constant 2.000000e+00 : f32
    %123 = vector.broadcast %cst_78 : f32 to vector<16x16xf32>
    %124 = arith.mulf %123, %118 : vector<16x16xf32>
    %cst_79 = arith.constant 8.99999984E-4 : f32
    %125 = vector.broadcast %cst_79 : f32 to vector<16x16xf32>
    %126 = arith.addf %124, %125 : vector<16x16xf32>
    %127 = arith.mulf %122, %126 : vector<16x16xf32>
    %128 = arith.addf %113, %114 : vector<16x16xf32>
    %cst_80 = arith.constant 9.99999974E-5 : f32
    %129 = vector.broadcast %cst_80 : f32 to vector<16x16xf32>
    %130 = arith.addf %128, %129 : vector<16x16xf32>
    %131 = arith.addf %116, %117 : vector<16x16xf32>
    %cst_81 = arith.constant 8.99999984E-4 : f32
    %132 = vector.broadcast %cst_81 : f32 to vector<16x16xf32>
    %133 = arith.addf %131, %132 : vector<16x16xf32>
    %134 = arith.mulf %130, %133 : vector<16x16xf32>
    %135 = arith.divf %127, %134 : vector<16x16xf32>
    %136 = vector.shape_cast %135 : vector<16x16xf32> to vector<1x16x16xf32>
    %cst_82 = arith.constant dense<0.000000e+00> : vector<1xf32>
    %137 = vector.multi_reduction <add>, %136, %cst_82 [1, 2] : vector<1x16x16xf32> to vector<1xf32>
    %138 = vector.shape_cast %137 : vector<1xf32> to vector<1x1x1xf32>
    %139 = vector.extract %138[0, 0, 0] : f32 from vector<1x1x1xf32>
    %cst_83 = arith.constant 2.560000e+02 : f32
    %140 = arith.divf %139, %cst_83 : f32
    %141 = vector.broadcast %140 : f32 to vector<1x1x1xf32>
    %c0_84 = arith.constant 0 : index
    %c0_85 = arith.constant 0 : index
    %c2_86 = arith.constant 2 : index
    %142 = vector.load %arg5[%c0_84, %c0_85, %c2_86] : memref<1x1x3xf32, #tpu.memory_space<vmem>>, vector<1x1x1xf32>
    tpu.vector_store %arg5[%c0_84, %c0_85, %c2_86], %141 {strides = array<i32>} : memref<1x1x3xf32, #tpu.memory_space<vmem>>, vector<1x1x1xf32>,
    return
  }
  func.func @transform_0(%arg0: i32) -> (i32, i32, i32, i32) {
    %c0_i32 = arith.constant 0 : i32
    %c0_i32_0 = arith.constant 0 : i32
    %c0_i32_1 = arith.constant 0 : i32
    %c0_i32_2 = arith.constant 0 : i32
    return %arg0, %c0_i32, %c0_i32_0, %c0_i32_1 : i32, i32, i32, i32
  }
  func.func @transform_1(%arg0: i32) -> (i32, i32, i32, i32) {
    %c0_i32 = arith.constant 0 : i32
    %c0_i32_0 = arith.constant 0 : i32
    %c0_i32_1 = arith.constant 0 : i32
    %c0_i32_2 = arith.constant 0 : i32
    return %arg0, %c0_i32, %c0_i32_0, %c0_i32_1 : i32, i32, i32, i32
  }
  func.func @transform_2(%arg0: i32) -> (i32, i32) {
    %c0_i32 = arith.constant 0 : i32
    %c0_i32_0 = arith.constant 0 : i32
    %c0_i32_1 = arith.constant 0 : i32
    return %c0_i32, %c0_i32_0 : i32, i32
  }
  func.func @transform_3(%arg0: i32) -> (i32, i32) {
    %c0_i32 = arith.constant 0 : i32
    %c0_i32_0 = arith.constant 0 : i32
    %c0_i32_1 = arith.constant 0 : i32
    return %c0_i32, %c0_i32_0 : i32, i32
  }
  func.func @transform_4(%arg0: i32) -> (i32, i32, i32) {
    %c0_i32 = arith.constant 0 : i32
    %c0_i32_0 = arith.constant 0 : i32
    %c0_i32_1 = arith.constant 0 : i32
    return %arg0, %c0_i32, %c0_i32_0 : i32, i32, i32
  }
}

</mosaic_0001>

<bundles_post_ra>
// kernel: tpu_custom_call.1
= control target key start
LH: loop header
LB: loop body
LE: loop exit
PB: predicated region body
PF: predicated region fallthrough
CT: control target
= control target key end

     0   :  { %s4254_s0 = inlined_call_operand.hbm [shape: f32[2,3,16,16], index: 0, kind: input, shape index: {}]   ;;  %s4255_s1 = inlined_call_operand.hbm [shape: f32[2,3,16,16], index: 1, kind: input, shape index: {}]   ;;  %s4256_s2 = inlined_call_operand.hbm [shape: f32[16,16], index: 2, kind: input, shape index: {}]   ;;  %s4257_s3 = inlined_call_operand.hbm [shape: f32[16,16], index: 3, kind: input, shape index: {}]   ;;  %s4258_s4 = inlined_call_operand.hbm [shape: f32[2,1,3], index: 4, kind: output, shape index: {}]  }
   0x1   :  { %4263 = sst [smem:[#allocation16_spill]] %s4254_s0 }
   0x2   :  { %9 = vsyncpa [#allocation3], 0 }
   0x3   :  { %11 = vsyncpa [#allocation3 + $0x1], 0 }
   0x4   :  { %12 = vsyncpa [#allocation6], 0 }
   0x5   :  { %14 = vsyncpa [#allocation6 + $0x1], 0 }
   0x6   :  { %15 = vsyncpa [#allocation9], 0 }
   0x7   :  { %16 = vsyncpa [#allocation4], 0 }
   0x8   :  { %18 = vsyncpa [#allocation4 + $0x1], 0  ;;  %s3808_s15 = smov 0   ;;  %s3810_s16 = smov 0  }
   0x9   :  { %s3812_s17 = smov 0   ;;  %s3814_s18 = smov 0  }
   0xa LB: > { %s3829_s19 = sadd.s32 4294967295, %s3774_s18   ;;  %s2952_s20 = sadd.s32 4294967294, %s3774_s18   ;;  %s3774_s18 = sphi %s3814_s18, %s4285_s18   ;;  %s3770_s17 = sphi %s3812_s17, %s4284_s17   ;;  %s3766_s16 = sphi %s3810_s16, %s4283_s16   ;;  %s3762_s15 = sphi %s3808_s15, %s4282_s15  }
   0xb   : > { %p44_p0 = scmp.ne.s32.totalorder %s3766_s16, %s3762_s15  ;;  %p4259_p1 = scmp.eq.s32.totalorder %s3829_s19, 0 }
   0xc   : > { %p142_p3 = scmp.eq.s32.totalorder %s2952_s20, 1  ;;  %p2953_p5 = scmp.ge.s32.totalorder %s3774_s18, 1 }
   0xd   : > { %p3838_p4 = por %p4259_p1, %p44_p0  ;;  %p149_p7 = scmp.lt.s32.totalorder %s3774_s18, 3 }
   0xe   : > { %p3843_p6 = por %p142_p3, %p44_p0  ;;  %s3776_s24 = smov [#allocation7]  }
   0xf   : > { %s4264_s21 = scalar_select %p3838_p4, 1, 0 }
  0x10   : > { %s4265_s22 = scalar_select %p3843_p6, 1, 0 }
  0x11   : > { %p3848_p8 = pnand %p2953_p5, %p149_p7  ;;  %s161_s25 = sshll.u32 %s3776_s24, 4  ;;  %s3852_s25 = int_to_ptr.vmem [resolvable:$true] %s161_s25 }
  0x12   : > { %s3777_s27 = smov [#allocation8]   ;;  %s3580_s5 = scalar_lea.hbm %s4256_s2, 256 }
  0x13   : > { %p3508_p9 = pneg %p3848_p8  ;;  %s174_s28 = sshll.u32 %s3777_s27, 4  ;;  %s3863_s28 = int_to_ptr.vmem [resolvable:$true] %s174_s28 }
  0x14   : > { %p3581_p12 = scmp.ne.s32.totalorder %s4256_s2, %s3580_s5  ;;  %p3587_p5 = scmp.lt.u32.totalorder %s3580_s5, %s4256_s2 }
  0x15   : > { %p3859_p11 = pnand %p3508_p9, %p4259_p1 }
  0x17   : > { %p3582_p13 = pneg %p3859_p11 }
  0x19   : > { %p3583_p0 = pnand %p3582_p13, %p3581_p12 }
  0x1b   : > { %p3584_p3 = pneg %p3583_p0 }
  0x1d   : > { %p3589_p7 = pnand %p3587_p5, %p3584_p3 }
  0x1f   : > { %3592 = shalt.err (!%p3589_p7)
}
  0x20   : > { %s3593_s10 = scalar_lea.vmem %s3852_s25, 256  ;;  %p3601_p2 = scmp.lt.s32.totalorder %s3852_s25, %s3852_s25 }
  0x21   : > { %p3594_p9 = scmp.ne.s32.totalorder %s3852_s25, %s3593_s10  ;;  %p3602_p12 = scmp.lt.s32.totalorder %s3593_s10, %s3593_s10 }
  0x23   : > { %p3596_p10 = pnand %p3594_p9, %p3582_p13  ;;  %p3603_p0 = por %p3602_p12, %p3601_p2 }
  0x25   : > { %p3597_p1 = pneg %p3596_p10 }
  0x27   : > { %p3604_p6 = pnand %p3603_p0, %p3597_p1 }
  0x29   : > { %3607 = shalt.err (!%p3604_p6)
}
  0x2a   : > { %s3778_s11 = smov 128   ;;  %s3779_s12 = smov 8  }
  0x2b   : > { %3511 = dma.hbm_to_vmem [thread:$0]  (!%p3859_p11), %s4256_s2, 256, %s3852_s25, [#allocation6], %s3778_s11, %s3778_s11, %s3779_s12  }
  0x2c   : > { %s3608_s27 = scalar_lea.hbm %s4257_s3, 256 }
  0x2d   : > { %p3609_p1 = scmp.ne.s32.totalorder %s4257_s3, %s3608_s27  ;;  %p3615_p10 = scmp.lt.u32.totalorder %s3608_s27, %s4257_s3 }
  0x2f   : > { %p3611_p2 = pnand %p3609_p1, %p3582_p13 }
  0x31   : > { %p3612_p6 = pneg %p3611_p2 }
  0x33   : > { %p3617_p3 = pnand %p3615_p10, %p3612_p6 }
  0x35   : > { %3620 = shalt.err (!%p3617_p3)
}
  0x36   : > { %s3621_s25 = scalar_lea.vmem %s3863_s28, 256  ;;  %p3629_p12 = scmp.lt.s32.totalorder %s3863_s28, %s3863_s28 }
  0x37   : > { %p3622_p5 = scmp.ne.s32.totalorder %s3863_s28, %s3621_s25  ;;  %p3630_p0 = scmp.lt.s32.totalorder %s3621_s25, %s3621_s25 }
  0x39   : > { %p3624_p7 = pnand %p3622_p5, %p3582_p13  ;;  %p3631_p1 = por %p3630_p0, %p3629_p12 }
  0x3b   : > { %p3625_p9 = pneg %p3624_p7 }
  0x3d   : > { %p3632_p2 = pnand %p3631_p1, %p3625_p9 }
  0x3f   : > { %3635 = shalt.err (!%p3632_p2)
}
  0x40   : > { %3514 = dma.hbm_to_vmem [thread:$0]  (!%p3859_p11), %s4257_s3, 256, %s3863_s28, [#allocation9], %s3778_s11, %s3778_s11, %s3779_s12  }
  0x41   : > { %s3924_s26 = sadd.s32 1, %s3774_s18   ;;  %s31_s9 = sadd.s32 1, %s3770_s17 }
  0x42   : > { %s28_s10 = ssub.s32 %s3774_s18, %s3924_s26  ;;  %p38_p13 = scmp.ne.s32.totalorder %s3770_s17, %s3766_s16 }
  0x43   : > { %p29_p6 = scmp.eq.s32.totalorder %s28_s10, 0  ;;  %p39_p10 = scmp.eq.s32.totalorder %s3774_s18, 0 }
  0x44   : > { %p4268_p3 = scmp.eq.s32.totalorder %s3829_s19, 1  ;;  %p3528_p7 = scmp.lt.s32.totalorder %s3774_s18, 2 }
  0x45   : > { %s3940_s14 = scalar_select %p29_p6, %s3770_s17, %s31_s9  }
  0x46   : > { %p3934_p5 = por %p4268_p3, %p38_p13  ;;  %p40_p9 = por %p39_p10, %p38_p13 }
  0x47   : > { %s188_s20 = sand.u32 1, %s3770_s17   ;;  %s4260_s24 = smul.u32 768, %s3774_s18 }
  0x48   : > { %s4269_s13 = scalar_select %p3934_p5, 1, 0 }
  0x49   : > { %s3943_s28 = smul.u32 48, %s188_s20  ;;  %p3946_p11 = pnand %p3528_p7, %p40_p9 }
  0x4a   : > { %s4271_s0 = sld [smem:[#allocation16_spill]]  ;;  %s3961_s8 = scalar_lea.sflag [#allocation3], %s188_s20 }
  0x4b   : > { %s192_s25 = scalar_lea.vmem [#allocation2], %s3943_s28  ;;  %p3638_p0 = pneg %p3946_p11 }
  0x4c   : > { %s199_s7 = sshll.u32 %s192_s25, 4  ;;  %s3959_s7 = int_to_ptr.vmem [resolvable:$true] %s199_s7 }
  0x50   : > { %s3956_s6 = scalar_lea.hbm %s4271_s0, %s4260_s24  ;;  %s3641_s5 = scalar_lea.hbm %s4271_s0, 1536 }
  0x51   : > { %s3636_s9 = scalar_lea.hbm %s3956_s6, 768  ;;  %p3642_p13 = scmp.lt.u32.totalorder %s3956_s6, %s4271_s0 }
  0x52   : > { %p3637_p12 = scmp.ne.s32.totalorder %s3956_s6, %s3636_s9  ;;  %p3643_p6 = scmp.lt.u32.totalorder %s3641_s5, %s3636_s9 }
  0x53   : > { %p3645_p3 = scmp.lt.u32.totalorder %s3636_s9, %s3956_s6 }
  0x54   : > { %p3639_p1 = pnand %p3638_p0, %p3637_p12  ;;  %p3644_p10 = por %p3643_p6, %p3642_p13 }
  0x56   : > { %p3640_p2 = pneg %p3639_p1  ;;  %p3646_p7 = por %p3645_p3, %p3644_p10 }
  0x58   : > { %p3647_p9 = pnand %p3646_p7, %p3640_p2 }
  0x5a   : > { %3650 = shalt.err (!%p3647_p9)
}
  0x5b   : > { %s3651_s20 = scalar_lea.vmem %s3959_s7, 768  ;;  %s3780_s25 = smov [#allocation2]  }
  0x5c   : > { %p3652_p12 = scmp.ne.s32.totalorder %s3959_s7, %s3651_s20  ;;  %s3656_s10 = sshll.u32 %s3780_s25, 4  ;;  %s3657_s10 = int_to_ptr.vmem [resolvable:$false] %s3656_s10 }
  0x5d   : > { %s3658_s24 = scalar_lea.vmem %s3657_s10, 1536  ;;  %p3659_p4 = scmp.lt.s32.totalorder %s3959_s7, %s3657_s10 }
  0x5e   : > { %p3654_p1 = pnand %p3652_p12, %p3638_p0  ;;  %p3660_p13 = scmp.lt.s32.totalorder %s3658_s24, %s3651_s20 }
  0x60   : > { %p3655_p5 = pneg %p3654_p1  ;;  %p3661_p6 = por %p3660_p13, %p3659_p4 }
  0x62   : > { %p3662_p10 = pnand %p3661_p6, %p3655_p5 }
  0x64   : > { %3665 = shalt.err (!%p3662_p10)
}
  0x65   : > { %3518 = dma.hbm_to_vmem [thread:$0]  (!%p3946_p11), %s3956_s6, 768, %s3959_s7, %s3961_s8, %s3778_s11, %s3778_s11, %s3779_s12  }
  0x66   : > { %s4272_s29 = smul.u32 768, %s3774_s18  ;;  %s213_s20 = scalar_lea.vmem [#allocation5], %s3943_s28 }
  0x67   : > { %s220_s25 = sshll.u32 %s213_s20, 4  ;;  %s4273_s10 = sand.u32 1, %s3774_s18   ;;  %s4000_s25 = int_to_ptr.vmem [resolvable:$true] %s220_s25 }
  0x68   : > { %s3997_s5 = scalar_lea.hbm %s4255_s1, %s4272_s29  ;;  %s4004_s24 = scalar_lea.sflag [#allocation6], %s4273_s10 }
  0x69   : > { %s3666_s0 = scalar_lea.hbm %s3997_s5, 768  ;;  %s3671_s8 = scalar_lea.hbm %s4255_s1, 1536 }
  0x6a   : > { %p3667_p4 = scmp.ne.s32.totalorder %s3997_s5, %s3666_s0  ;;  %p3672_p3 = scmp.lt.u32.totalorder %s3997_s5, %s4255_s1 }
  0x6b   : > { %p3673_p7 = scmp.lt.u32.totalorder %s3671_s8, %s3666_s0  ;;  %p3675_p12 = scmp.lt.u32.totalorder %s3666_s0, %s3997_s5 }
  0x6c   : > { %p3669_p5 = pnand %p3667_p4, %p3638_p0 }
  0x6d   : > { %p3674_p9 = por %p3673_p7, %p3672_p3 }
  0x6e   : > { %p3670_p2 = pneg %p3669_p5 }
  0x6f   : > { %p3676_p1 = por %p3675_p12, %p3674_p9 }
  0x71   : > { %p3677_p13 = pnand %p3676_p1, %p3670_p2 }
  0x73   : > { %3680 = shalt.err (!%p3677_p13)
}
  0x74   : > { %s3681_s28 = scalar_lea.vmem %s4000_s25, 768  ;;  %s3781_s30 = smov [#allocation5]  }
  0x75   : > { %p3682_p6 = scmp.ne.s32.totalorder %s4000_s25, %s3681_s28  ;;  %s3686_s20 = sshll.u32 %s3781_s30, 4  ;;  %s3687_s20 = int_to_ptr.vmem [resolvable:$false] %s3686_s20 }
  0x76   : > { %s3688_s10 = scalar_lea.vmem %s3687_s20, 1536  ;;  %p3689_p5 = scmp.lt.s32.totalorder %s4000_s25, %s3687_s20 }
  0x77   : > { %p3684_p10 = pnand %p3682_p6, %p3638_p0  ;;  %p3690_p3 = scmp.lt.s32.totalorder %s3688_s10, %s3681_s28 }
  0x79   : > { %p3685_p4 = pneg %p3684_p10  ;;  %p3691_p7 = por %p3690_p3, %p3689_p5 }
  0x7b   : > { %p3692_p9 = pnand %p3691_p7, %p3685_p4 }
  0x7d   : > { %3695 = shalt.err (!%p3692_p9)
}
  0x7e   : > { %3521 = dma.hbm_to_vmem [thread:$0]  (!%p3946_p11), %s3997_s5, 768, %s4000_s25, %s4004_s24, %s3778_s11, %s3778_s11, %s3779_s12  }
  0x7f   : > { %232 = sbr.rel (%p3848_p8) target bundleno = 880 (0x370), region = 36  ;;  %s4036_s0 = sand.u32 (!%p3848_p8), 1, %s3766_s16  }
  0x80   : > { %s3487_s6 = smul.u32 (!%p3848_p8), 48, %s4036_s0  ;;  %s235_s7 = scalar_lea.sflag (!%p3848_p8), [#allocation3], %s4036_s0 }
  0x81   : > { %p4274_p0 = scmp.ne.s32.totalorder (!%p3848_p8), %s4264_s21, 0 }
  0x82   : > { %s4040_s8 = scalar_lea.vmem (!%p3848_p8), [#allocation2], %s3487_s6 }
  0x86   : > { %3741 = dma.done.wait (%p4274_p0), %s235_s7, 768  }
  0x87   : > { %3743 = vsyncadd (%p4274_p0), %s235_s7, 4294966528  ;;  %s243_s11 = sand.u32 1, %s3829_s19   ;;  %s4047_s12 = scalar_lea.vmem [#allocation5], %s3487_s6 }
  0x88   : > { %s244_s23 = scalar_lea.sflag [#allocation6], %s243_s11 }
  0x89   : > { %3745 = dma.done.wait (%p4274_p0), %s244_s23, 768  }
  0x8a   : > { %3747 = vsyncadd (%p4274_p0), %s244_s23, 4294966528  ;;  %p4275_p8 = scmp.eq.s32.totalorder %s3829_s19, 0 }
  0x8c   : > { %3749 = dma.done.wait (%p4275_p8), [#allocation6], 256   ;;  %p4276_p11 = pmov %p4275_p8 }
  0x8d   : > { %p4277_p2 = pmov %p4275_p8 }
  0x8e   : > { %3751 = vsyncadd (%p4276_p11), [#allocation6], 4294967040 }
  0x8f   : > { %3753 = dma.done.wait (%p4277_p2), [#allocation9], 256   ;;  %p4278_p12 = pmov %p4277_p2 }
  0x90   : > { %vm292_vm0 = vcmask 130048   ;;  %v286_v0 = vld [vmem:[#allocation8] sm:$0xff]  ;;  %v287_v1 = vld [vmem:[#allocation8 + $0x8] sm:$0xff]  ;;  %v4135_v33 = vld [vmem:[#allocation7] sm:$0xff]  ;;  %vm1137_vm1 = vcmask 0   ;;  %s283_s5 = scalar_lea.vmem [#allocation10], %s4036_s0 }
  0x91   : > { %3755 = vsyncadd (%p4278_p12), [#allocation9], 4294967040  ;;  %v288_v2 = vld [vmem:[%s4040_s8] sm:$0xff]  ;;  %v4062_v3 = vpack.c.bf16 %v287_v1, %v286_v0  ;;  %v289_v4 = vld [vmem:[%s4040_s8 + $0x8] sm:$0xff]  ;;  %3164 = vmatprep.mubr.msk.f32.mxu1 %vm292_vm0, %v4135_v33  ;;  %vm1983_vm2 = vcmask 8200   ;;  %s3030_s29 = sshll.u32 %s3829_s19, 4 }
  0x92   : > { %3157 = vmatprep.mubr.msk.f32.mxu0 %vm292_vm0, %v288_v2  ;;  %v290_v5 = vld [vmem:[%s4047_s12] sm:$0xff]  ;;  %v611_v6 = vmul.f32 %v288_v2, %v288_v2  ;;  %v291_v7 = vld [vmem:[%s4047_s12 + $0x8] sm:$0xff]  ;;  %v612_v8 = vmul.f32 %v289_v4, %v289_v4  ;;  %v2982_v13 = vld [vmem:[%s4040_s8 + $0x10] sm:$0xff]  ;;  %s2844_s9 = sshll.u32 %s283_s5, 4  ;;  %vm2829_vm3 = vcmask 16400   ;;  %s4210_s6 = scalar_lea.hbm %s4258_s4, %s3030_s29  ;;  %s4212_s9 = int_to_ptr.vmem [resolvable:$true] %s2844_s9 }
  0x93   : > { %3364 = vmatprep.subr.bf16.mxu0 %v4062_v3  ;;  %v769_v9 = vmul.f32 %v290_v5, %v290_v5  ;;  %v770_v10 = vmul.f32 %v291_v7, %v291_v7  ;;  %v927_v11 = vmul.f32 %v290_v5, %v288_v2  ;;  %v928_v12 = vmul.f32 %v291_v7, %v289_v4  ;;  %v2983_v14 = vld [vmem:[%s4040_s8 + $0x18] sm:$0xff]  ;;  %v2984_v15 = vld [vmem:[%s4047_s12 + $0x10] sm:$0xff]  ;;  %v3006_v23 = vld [vmem:[%s4040_s8 + $0x20] sm:$0xff]  ;;  %s2832_s7 = scalar_lea.sflag [#allocation4], %s4036_s0  ;;  %p4279_p13 = scmp.ne.s32.totalorder %s4269_s13, 0 }
  0x94   : > { %3366 = vmatpush3.bf16.msra.mxu0 %v4062_v3  ;;  %v1457_v16 = vmul.f32 %v2982_v13, %v2982_v13  ;;  %v2985_v17 = vld [vmem:[%s4047_s12 + $0x18] sm:$0xff]  ;;  %v1458_v18 = vmul.f32 %v2983_v14, %v2983_v14  ;;  %v1615_v19 = vmul.f32 %v2984_v15, %v2984_v15  ;;  %v1773_v21 = vmul.f32 %v2984_v15, %v2982_v13  ;;  %v3007_v24 = vld [vmem:[%s4040_s8 + $0x28] sm:$0xff]  ;;  %v3008_v25 = vld [vmem:[%s4047_s12 + $0x20] sm:$0xff]  ;;  %s3696_s8 = scalar_lea.vmem %s4212_s9, 16  ;;  %s3782_s19 = smov [#allocation10]  }
  0x95   : > { %3372 = vmatprep.subr.bf16.mxu0 %v4062_v3  ;;  %v1616_v20 = vmul.f32 %v2985_v17, %v2985_v17  ;;  %v1774_v22 = vmul.f32 %v2985_v17, %v2983_v14  ;;  %v2303_v26 = vmul.f32 %v3006_v23, %v3006_v23  ;;  %v3009_v27 = vld [vmem:[%s4047_s12 + $0x28] sm:$0xff]  ;;  %v2304_v28 = vmul.f32 %v3007_v24, %v3007_v24  ;;  %p3697_p1 = scmp.ne.s32.totalorder %s4212_s9, %s3696_s8  ;;  %s3700_s11 = sshll.u32 %s3782_s19, 4  ;;  %s3701_s11 = int_to_ptr.vmem [resolvable:$false] %s3700_s11 }
  0x96   : > { %v2461_v29 = vmul.f32 %v3008_v25, %v3008_v25  ;;  %v2462_v30 = vmul.f32 %v3009_v27, %v3009_v27  ;;  %v2619_v31 = vmul.f32 %v3008_v25, %v3006_v23  ;;  %v2620_v32 = vmul.f32 %v3009_v27, %v3007_v24  ;;  %v4139_v39 = vld [vmem:[#allocation7 + $0x8] sm:$0xff]  ;;  %s3702_s23 = scalar_lea.vmem %s3701_s11, 32  ;;  %p3703_p4 = scmp.lt.s32.totalorder %s4212_s9, %s3701_s11 }
  0x97   : > { %3158 = vmatmul.mubr.msk.f32.vlgmr.msra.gmra.mrb[0].mxu0 %vm292_vm0, %v289_v4  ;;  %p3698_p6 = pnand %p3697_p1, %p4279_p13  ;;  %p3704_p5 = scmp.lt.s32.totalorder %s3702_s23, %s3696_s8 }
  0x98   : > { %3374 = vmatpush3.bf16.msra.mxu0 %v4062_v3  ;;  %3171 = vmatprep.mubr.msk.f32.mxu0 %vm292_vm0, %v290_v5 }
  0x99   : > { %3380 = vmatprep.subr.bf16.mxu0 %v4062_v3  ;;  %p3699_p10 = pneg %p3698_p6  ;;  %p3705_p3 = por %p3704_p5, %p3703_p4 }
  0x9b   : > { %3172 = vmatmul.mubr.msk.f32.vlgmr.msra.gmra.mrb[2].mxu0 %vm292_vm0, %v291_v7  ;;  %p3706_p7 = pnand %p3705_p3, %p3699_p10 }
  0x9c   : > { %3382 = vmatpush3.bf16.msra.mxu0 %v4062_v3  ;;  %3185 = vmatprep.mubr.msk.f32.mxu0 %vm292_vm0, %v611_v6 }
  0x9d   : > { %3388 = vmatprep.subr.bf16.mxu0 %v4062_v3 }
  0x9f   : > { %3186 = vmatmul.mubr.msk.f32.vlgmr.msra.gmra.mrb[4].mxu0 %vm292_vm0, %v612_v8 }
  0xa0   : > { %3390 = vmatpush3.bf16.msra.mxu0 %v4062_v3  ;;  %3199 = vmatprep.mubr.msk.f32.mxu0 %vm292_vm0, %v769_v9 }
  0xa1   : > { %3396 = vmatprep.subr.bf16.mxu0 %v4062_v3 }
  0xa3   : > { %3200 = vmatmul.mubr.msk.f32.vlgmr.msra.gmra.mrb[6].mxu0 %vm292_vm0, %v770_v10 }
  0xa4   : > { %3398 = vmatpush3.bf16.msra.mxu0 %v4062_v3  ;;  %3213 = vmatprep.mubr.msk.f32.mxu0 %vm292_vm0, %v927_v11 }
  0xa5   : > { %3404 = vmatprep.subr.bf16.mxu0 %v4062_v3 }
  0xa7   : > { %3214 = vmatmul.mubr.msk.f32.vlgmr.msra.gmra.mrb[8].mxu0 %vm292_vm0, %v928_v12 }
  0xa8   : > { %3406 = vmatpush3.bf16.msra.mxu0 %v4062_v3  ;;  %3227 = vmatprep.mubr.msk.f32.mxu0 %vm292_vm0, %v2982_v13 }
  0xa9   : > { %3412 = vmatprep.subr.bf16.mxu0 %v4062_v3 }
  0xab   : > { %3228 = vmatmul.mubr.msk.f32.vlgmr.msra.gmra.mrb[10].mxu0 %vm292_vm0, %v2983_v14 }
  0xac   : > { %3414 = vmatpush3.bf16.msra.mxu0 %v4062_v3  ;;  %3241 = vmatprep.mubr.msk.f32.mxu0 %vm292_vm0, %v2984_v15 }
  0xad   : > { %3420 = vmatprep.subr.bf16.mxu0 %v4062_v3 }
  0xaf   : > { %3242 = vmatmul.mubr.msk.f32.vlgmr.msra.gmra.mrb[12].mxu0 %vm292_vm0, %v2985_v17 }
  0xb0   : > { %3422 = vmatpush3.bf16.msra.mxu0 %v4062_v3  ;;  %3255 = vmatprep.mubr.msk.f32.mxu0 %vm292_vm0, %v1457_v16 }
  0xb1   : > { %3428 = vmatprep.subr.bf16.mxu0 %v4062_v3 }
  0xb3   : > { %3256 = vmatmul.mubr.msk.f32.vlgmr.msra.gmra.mrb[14].mxu0 %vm292_vm0, %v1458_v18 }
  0xb4   : > { %3430 = vmatpush3.bf16.msra.mxu0 %v4062_v3  ;;  %3269 = vmatprep.mubr.msk.f32.mxu0 %vm292_vm0, %v1615_v19 }
  0xb5   : > { %3436 = vmatprep.subr.bf16.mxu0 %v4062_v3 }
  0xb7   : > { %3270 = vmatmul.mubr.msk.f32.vlgmr.msra.gmra.mrb[16].mxu0 %vm292_vm0, %v1616_v20 }
  0xb8   : > { %3438 = vmatpush3.bf16.msra.mxu0 %v4062_v3  ;;  %3283 = vmatprep.mubr.msk.f32.mxu0 %vm292_vm0, %v1773_v21 }
  0xb9   : > { %3444 = vmatprep.subr.bf16.mxu0 %v4062_v3 }
  0xbb   : > { %3284 = vmatmul.mubr.msk.f32.vlgmr.msra.gmra.mrb[18].mxu0 %vm292_vm0, %v1774_v22 }
  0xbc   : > { %3446 = vmatpush3.bf16.msra.mxu0 %v4062_v3  ;;  %3297 = vmatprep.mubr.msk.f32.mxu0 %vm292_vm0, %v3006_v23 }
  0xbd   : > { %3452 = vmatprep.subr.bf16.mxu0 %v4062_v3 }
  0xbf   : > { %3298 = vmatmul.mubr.msk.f32.vlgmr.msra.gmra.mrb[20].mxu0 %vm292_vm0, %v3007_v24 }
  0xc0   : > { %3454 = vmatpush3.bf16.msra.mxu0 %v4062_v3  ;;  %3311 = vmatprep.mubr.msk.f32.mxu0 %vm292_vm0, %v3008_v25 }
  0xc1   : > { %3460 = vmatprep.subr.bf16.mxu0 %v4062_v3 }
  0xc3   : > { %3312 = vmatmul.mubr.msk.f32.vlgmr.msra.gmra.mrb[22].mxu0 %vm292_vm0, %v3009_v27 }
  0xc4   : > { %3462 = vmatpush3.bf16.msra.mxu0 %v4062_v3  ;;  %3325 = vmatprep.mubr.msk.f32.mxu0 %vm292_vm0, %v2303_v26 }
  0xc5   : > { %3468 = vmatprep.subr.bf16.mxu0 %v4062_v3 }
  0xc7   : > { %3326 = vmatmul.mubr.msk.f32.vlgmr.msra.gmra.mrb[24].mxu0 %vm292_vm0, %v2304_v28 }
  0xc8   : > { %3470 = vmatpush3.bf16.msra.mxu0 %v4062_v3  ;;  %3339 = vmatprep.mubr.msk.f32.mxu0 %vm292_vm0, %v2461_v29 }
  0xc9   : > { %3476 = vmatprep.subr.bf16.mxu0 %v4062_v3 }
  0xcb   : > { %3340 = vmatmul.mubr.msk.f32.vlgmr.msra.gmra.mrb[26].mxu0 %vm292_vm0, %v2462_v30 }
  0xcc   : > { %3478 = vmatpush3.bf16.msra.mxu0 %v4062_v3  ;;  %3353 = vmatprep.mubr.msk.f32.mxu0 %vm292_vm0, %v2619_v31 }
  0xcf   : > { %3354 = vmatmul.mubr.msk.f32.vlgmr.msra.gmra.mrb[28].mxu0 %vm292_vm0, %v2620_v32 }
 0x16a   : > { %v3159_v34 = vpop.f32.mrb[0].mxu0 }
 0x16b   : > { %v365_v35 = vpop.f32.mrb[1].mxu0 }
 0x16c   : > { %v3367_v36 = vpack.c.bf16 %v3159_v34, %v365_v35 }
 0x16e   : > { %3368 = vmatprep.subr.bf16.mxu1 %v3367_v36  ;;  %v3173_v37 = vpop.f32.mrb[2].mxu0 }
 0x16f   : > { %3370 = vmatpush3.bf16.msra.mxu1 %v3367_v36  ;;  %v527_v38 = vpop.f32.mrb[3].mxu0 }
 0x170   : > { %v3375_v40 = vpack.c.bf16 %v3173_v37, %v527_v38 }
 0x172   : > { %3165 = vmatmul.mubr.msk.f32.vlgmr.msra.gmra.mrb[0].mxu1 %vm292_vm0, %v4139_v39  ;;  %3376 = vmatprep.subr.bf16.mxu1 %v3375_v40  ;;  %v3187_v41 = vpop.f32.mrb[4].mxu0 }
 0x173   : > { %3378 = vmatpush3.bf16.msra.mxu1 %v3375_v40  ;;  %v685_v42 = vpop.f32.mrb[5].mxu0  ;;  %3178 = vmatprep.mubr.msk.f32.mxu1 %vm292_vm0, %v4135_v33 }
 0x174   : > { %v3383_v43 = vpack.c.bf16 %v3187_v41, %v685_v42 }
 0x176   : > { %3179 = vmatmul.mubr.msk.f32.vlgmr.msra.gmra.mrb[2].mxu1 %vm292_vm0, %v4139_v39  ;;  %3384 = vmatprep.subr.bf16.mxu1 %v3383_v43  ;;  %v3201_v44 = vpop.f32.mrb[6].mxu0 }
 0x177   : > { %3386 = vmatpush3.bf16.msra.mxu1 %v3383_v43  ;;  %v843_v45 = vpop.f32.mrb[7].mxu0  ;;  %3192 = vmatprep.mubr.msk.f32.mxu1 %vm292_vm0, %v4135_v33 }
 0x178   : > { %v3391_v46 = vpack.c.bf16 %v3201_v44, %v843_v45 }
 0x17a   : > { %3193 = vmatmul.mubr.msk.f32.vlgmr.msra.gmra.mrb[4].mxu1 %vm292_vm0, %v4139_v39  ;;  %3392 = vmatprep.subr.bf16.mxu1 %v3391_v46  ;;  %v3215_v47 = vpop.f32.mrb[8].mxu0 }
 0x17b   : > { %3394 = vmatpush3.bf16.msra.mxu1 %v3391_v46  ;;  %v1001_v48 = vpop.f32.mrb[9].mxu0  ;;  %3206 = vmatprep.mubr.msk.f32.mxu1 %vm292_vm0, %v4135_v33 }
 0x17c   : > { %v3399_v49 = vpack.c.bf16 %v3215_v47, %v1001_v48 }
 0x17e   : > { %3207 = vmatmul.mubr.msk.f32.vlgmr.msra.gmra.mrb[6].mxu1 %vm292_vm0, %v4139_v39  ;;  %3400 = vmatprep.subr.bf16.mxu1 %v3399_v49  ;;  %v3229_v50 = vpop.f32.mrb[10].mxu0 }
 0x17f   : > { %3402 = vmatpush3.bf16.msra.mxu1 %v3399_v49  ;;  %v1217_v51 = vpop.f32.mrb[11].mxu0  ;;  %3220 = vmatprep.mubr.msk.f32.mxu1 %vm292_vm0, %v4135_v33 }
 0x180   : > { %v3407_v52 = vpack.c.bf16 %v3229_v50, %v1217_v51 }
 0x182   : > { %3221 = vmatmul.mubr.msk.f32.vlgmr.msra.gmra.mrb[8].mxu1 %vm292_vm0, %v4139_v39  ;;  %3408 = vmatprep.subr.bf16.mxu1 %v3407_v52  ;;  %v3243_v53 = vpop.f32.mrb[12].mxu0 }
 0x183   : > { %3410 = vmatpush3.bf16.msra.mxu1 %v3407_v52  ;;  %v1373_v54 = vpop.f32.mrb[13].mxu0  ;;  %3234 = vmatprep.mubr.msk.f32.mxu1 %vm292_vm0, %v4135_v33 }
 0x184   : > { %v3415_v55 = vpack.c.bf16 %v3243_v53, %v1373_v54 }
 0x186   : > { %3235 = vmatmul.mubr.msk.f32.vlgmr.msra.gmra.mrb[10].mxu1 %vm292_vm0, %v4139_v39  ;;  %3416 = vmatprep.subr.bf16.mxu1 %v3415_v55  ;;  %v3257_v56 = vpop.f32.mrb[14].mxu0 }
 0x187   : > { %3418 = vmatpush3.bf16.msra.mxu1 %v3415_v55  ;;  %v1531_v57 = vpop.f32.mrb[15].mxu0  ;;  %3248 = vmatprep.mubr.msk.f32.mxu1 %vm292_vm0, %v4135_v33 }
 0x188   : > { %v3423_v58 = vpack.c.bf16 %v3257_v56, %v1531_v57 }
 0x18a   : > { %3249 = vmatmul.mubr.msk.f32.vlgmr.msra.gmra.mrb[12].mxu1 %vm292_vm0, %v4139_v39  ;;  %3424 = vmatprep.subr.bf16.mxu1 %v3423_v58  ;;  %v3271_v59 = vpop.f32.mrb[16].mxu0 }
 0x18b   : > { %3426 = vmatpush3.bf16.msra.mxu1 %v3423_v58  ;;  %v1689_v60 = vpop.f32.mrb[17].mxu0  ;;  %3262 = vmatprep.mubr.msk.f32.mxu1 %vm292_vm0, %v4135_v33 }
 0x18c   : > { %v3431_v61 = vpack.c.bf16 %v3271_v59, %v1689_v60 }
 0x18e   : > { %3263 = vmatmul.mubr.msk.f32.vlgmr.msra.gmra.mrb[14].mxu1 %vm292_vm0, %v4139_v39  ;;  %3432 = vmatprep.subr.bf16.mxu1 %v3431_v61  ;;  %v3285_v62 = vpop.f32.mrb[18].mxu0 }
 0x18f   : > { %3434 = vmatpush3.bf16.msra.mxu1 %v3431_v61  ;;  %v1847_v63 = vpop.f32.mrb[19].mxu0  ;;  %3276 = vmatprep.mubr.msk.f32.mxu1 %vm292_vm0, %v4135_v33 }
 0x190   : > { %v3439_v0 = vpack.c.bf16 %v3285_v62, %v1847_v63 }
 0x192   : > { %3277 = vmatmul.mubr.msk.f32.vlgmr.msra.gmra.mrb[16].mxu1 %vm292_vm0, %v4139_v39  ;;  %3440 = vmatprep.subr.bf16.mxu1 %v3439_v0  ;;  %v3299_v1 = vpop.f32.mrb[20].mxu0 }
 0x193   : > { %3442 = vmatpush3.bf16.msra.mxu1 %v3439_v0  ;;  %v2063_v2 = vpop.f32.mrb[21].mxu0  ;;  %3290 = vmatprep.mubr.msk.f32.mxu1 %vm292_vm0, %v4135_v33 }
 0x194   : > { %v3447_v3 = vpack.c.bf16 %v3299_v1, %v2063_v2 }
 0x196   : > { %3291 = vmatmul.mubr.msk.f32.vlgmr.msra.gmra.mrb[18].mxu1 %vm292_vm0, %v4139_v39  ;;  %3448 = vmatprep.subr.bf16.mxu1 %v3447_v3  ;;  %v3313_v4 = vpop.f32.mrb[22].mxu0 }
 0x197   : > { %3450 = vmatpush3.bf16.msra.mxu1 %v3447_v3  ;;  %v2219_v5 = vpop.f32.mrb[23].mxu0  ;;  %3304 = vmatprep.mubr.msk.f32.mxu1 %vm292_vm0, %v4135_v33 }
 0x198   : > { %v3455_v6 = vpack.c.bf16 %v3313_v4, %v2219_v5 }
 0x19a   : > { %3305 = vmatmul.mubr.msk.f32.vlgmr.msra.gmra.mrb[20].mxu1 %vm292_vm0, %v4139_v39  ;;  %3456 = vmatprep.subr.bf16.mxu1 %v3455_v6  ;;  %v3327_v7 = vpop.f32.mrb[24].mxu0 }
 0x19b   : > { %3458 = vmatpush3.bf16.msra.mxu1 %v3455_v6  ;;  %v2377_v8 = vpop.f32.mrb[25].mxu0  ;;  %3318 = vmatprep.mubr.msk.f32.mxu1 %vm292_vm0, %v4135_v33 }
 0x19c   : > { %v3463_v9 = vpack.c.bf16 %v3327_v7, %v2377_v8 }
 0x19e   : > { %3319 = vmatmul.mubr.msk.f32.vlgmr.msra.gmra.mrb[22].mxu1 %vm292_vm0, %v4139_v39  ;;  %3464 = vmatprep.subr.bf16.mxu1 %v3463_v9  ;;  %v3341_v10 = vpop.f32.mrb[26].mxu0 }
 0x19f   : > { %3466 = vmatpush3.bf16.msra.mxu1 %v3463_v9  ;;  %v2535_v11 = vpop.f32.mrb[27].mxu0  ;;  %3332 = vmatprep.mubr.msk.f32.mxu1 %vm292_vm0, %v4135_v33 }
 0x1a0   : > { %v3471_v12 = vpack.c.bf16 %v3341_v10, %v2535_v11 }
 0x1a2   : > { %3333 = vmatmul.mubr.msk.f32.vlgmr.msra.gmra.mrb[24].mxu1 %vm292_vm0, %v4139_v39  ;;  %3472 = vmatprep.subr.bf16.mxu1 %v3471_v12  ;;  %v3355_v13 = vpop.f32.mrb[28].mxu0 }
 0x1a3   : > { %3474 = vmatpush3.bf16.msra.mxu1 %v3471_v12  ;;  %v2693_v14 = vpop.f32.mrb[29].mxu0  ;;  %3346 = vmatprep.mubr.msk.f32.mxu1 %vm292_vm0, %v4135_v33 }
 0x1a4   : > { %v3479_v15 = vpack.c.bf16 %v3355_v13, %v2693_v14 }
 0x1a6   : > { %3347 = vmatmul.mubr.msk.f32.vlgmr.msra.gmra.mrb[26].mxu1 %vm292_vm0, %v4139_v39  ;;  %3480 = vmatprep.subr.bf16.mxu1 %v3479_v15 }
 0x1a7   : > { %3482 = vmatpush3.bf16.msra.mxu1 %v3479_v15  ;;  %3360 = vmatprep.mubr.msk.f32.mxu1 %vm292_vm0, %v4135_v33 }
 0x1aa   : > { %3361 = vmatmul.mubr.msk.f32.vlgmr.msra.gmra.mrb[28].mxu1 %vm292_vm0, %v4139_v39 }
 0x245   : > { %v3166_v16 = vpop.f32.mrb[0].mxu1 }
 0x246   : > { %v446_v17 = vpop.f32.mrb[1].mxu1  ;;  %v1086_v19 = vmul.f32 %v3166_v16, %v3166_v16 }
 0x247   : > { %v1085_v23 = vmul.f32 %v446_v17, %v446_v17 }
 0x249   : > { %v3180_v18 = vpop.f32.mrb[2].mxu1 }
 0x24a   : > { %v1088_v20 = vmul.f32 %v3180_v18, %v3180_v18  ;;  %v1090_v21 = vmul.f32 %v3180_v18, %v3166_v16  ;;  %v602_v22 = vpop.f32.mrb[3].mxu1 }
 0x24b   : > { %v1087_v24 = vmul.f32 %v602_v22, %v602_v22  ;;  %v1089_v25 = vmul.f32 %v602_v22, %v446_v17 }
 0x24c   : > { %v1108_v26 = vadd.f32 %v1088_v20, %v1086_v19  ;;  %v1098_v39 = vmul.f32 2.0, %v1090_v21 }
 0x24d   : > { %v1107_v27 = vadd.f32 %v1087_v24, %v1085_v23  ;;  %v3194_v28 = vpop.f32.mrb[4].mxu1  ;;  %v1097_v44 = vmul.f32 2.0, %v1089_v25 }
 0x24e   : > { %v1092_v29 = vsub.f32 %v3194_v28, %v1086_v19  ;;  %v760_v30 = vpop.f32.mrb[5].mxu1  ;;  %v1110_v40 = vadd.f32 0.0001, %v1108_v26  ;;  %v1100_v53 = vadd.f32 0.0001, %v1098_v39 }
 0x24f   : > { %v1091_v31 = vsub.f32 %v760_v30, %v1085_v23  ;;  %v1109_v45 = vadd.f32 0.0001, %v1107_v27  ;;  %v1099_v56 = vadd.f32 0.0001, %v1097_v44 }
 0x251   : > { %v3208_v32 = vpop.f32.mrb[6].mxu1 }
 0x252   : > { %v1094_v33 = vsub.f32 %v3208_v32, %v1088_v20  ;;  %v918_v34 = vpop.f32.mrb[7].mxu1 }
 0x253   : > { %v1093_v35 = vsub.f32 %v918_v34, %v1087_v24 }
 0x254   : > { %v1112_v36 = vadd.f32 %v1094_v33, %v1092_v29 }
 0x255   : > { %v1111_v37 = vadd.f32 %v1093_v35, %v1091_v31  ;;  %v3222_v38 = vpop.f32.mrb[8].mxu1 }
 0x256   : > { %v1114_v41 = vadd.f32 0.0009, %v1112_v36  ;;  %v1096_v42 = vsub.f32 %v3222_v38, %v1090_v21  ;;  %v1076_v43 = vpop.f32.mrb[9].mxu1 }
 0x257   : > { %v1113_v46 = vadd.f32 0.0009, %v1111_v37  ;;  %v1095_v47 = vsub.f32 %v1076_v43, %v1089_v25 }
 0x258   : > { %v1116_v48 = vmul.f32 %v1114_v41, %v1110_v40  ;;  %v1102_v49 = vmul.f32 2.0, %v1096_v42 }
 0x259   : > { %v1115_v50 = vmul.f32 %v1113_v46, %v1109_v45  ;;  %v1101_v51 = vmul.f32 2.0, %v1095_v47  ;;  %v3236_v52 = vpop.f32.mrb[10].mxu1 }
 0x25a   : > { %3568 = vrcp.f32 %v1116_v48  ;;  %v1104_v54 = vadd.f32 0.0009, %v1102_v49  ;;  %v1292_v55 = vpop.f32.mrb[11].mxu1  ;;  %v1932_v61 = vmul.f32 %v3236_v52, %v3236_v52 }
 0x25b   : > { %3570 = vrcp.f32 %v1115_v50  ;;  %v1103_v57 = vadd.f32 0.0009, %v1101_v51  ;;  %v1931_v1 = vmul.f32 %v1292_v55, %v1292_v55 }
 0x25c   : > { %v1106_v58 = vmul.f32 %v1104_v54, %v1100_v53 }
 0x25d   : > { %v1105_v59 = vmul.f32 %v1103_v57, %v1099_v56  ;;  %v3250_v60 = vpop.f32.mrb[12].mxu1 }
 0x25e   : > { %v1934_v62 = vmul.f32 %v3250_v60, %v3250_v60  ;;  %v1936_v63 = vmul.f32 %v3250_v60, %v3236_v52  ;;  %v1448_v0 = vpop.f32.mrb[13].mxu1 }
 0x25f   : > { %v1933_v2 = vmul.f32 %v1448_v0, %v1448_v0  ;;  %v1935_v3 = vmul.f32 %v1448_v0, %v1292_v55 }
 0x260   : > { %v1954_v4 = vadd.f32 %v1934_v62, %v1932_v61  ;;  %v1944_v24 = vmul.f32 2.0, %v1936_v63 }
 0x261   : > { %v1953_v5 = vadd.f32 %v1933_v2, %v1931_v1  ;;  %v3264_v6 = vpop.f32.mrb[14].mxu1  ;;  %v1943_v29 = vmul.f32 2.0, %v1935_v3 }
 0x262   : > { %v1938_v7 = vsub.f32 %v3264_v6, %v1932_v61  ;;  %v1606_v8 = vpop.f32.mrb[15].mxu1  ;;  %v1956_v25 = vadd.f32 0.0001, %v1954_v4  ;;  %v1946_v38 = vadd.f32 0.0001, %v1944_v24 }
 0x263   : > { %v1937_v9 = vsub.f32 %v1606_v8, %v1931_v1  ;;  %v1955_v30 = vadd.f32 0.0001, %v1953_v5  ;;  %v1945_v41 = vadd.f32 0.0001, %v1943_v29 }
 0x264   : > { %v3569_v10 = vpop.eup %3568 }
 0x265   : > { %v3571_v11 = vpop.eup %3570  ;;  %v3278_v12 = vpop.f32.mrb[16].mxu1  ;;  %v1120_v13 = vmul.f32 %v3569_v10, %v1106_v58 }
 0x266   : > { %v1940_v14 = vsub.f32 %v3278_v12, %v1934_v62  ;;  %v1764_v15 = vpop.f32.mrb[17].mxu1  ;;  %v1118_v16 = vmul.f32 %v3571_v11, %v1105_v59 }
 0x267   : > { %v1939_v17 = vsub.f32 %v1764_v15, %v1933_v2  ;;  %v1122_v18 = vsel %vm292_vm0, %v1120_v13, 0.0 }
 0x268   : > { %v1958_v19 = vadd.f32 %v1940_v14, %v1938_v7  ;;  %v1121_v20 = vsel %vm292_vm0, %v1118_v16, 0.0 }
 0x269   : > { %v1957_v21 = vadd.f32 %v1939_v17, %v1937_v9  ;;  %v3292_v22 = vpop.f32.mrb[18].mxu1  ;;  %v1123_v23 = vadd.f32 %v1122_v18, %v1121_v20 }
 0x26a   : > { %v1960_v26 = vadd.f32 0.0009, %v1958_v19  ;;  %v1942_v27 = vsub.f32 %v3292_v22, %v1936_v63  ;;  %v1922_v28 = vpop.f32.mrb[19].mxu1 }
 0x26b   : > { %v1959_v31 = vadd.f32 0.0009, %v1957_v21  ;;  %v1941_v32 = vsub.f32 %v1922_v28, %v1935_v3  ;;  %1124 = vadd.xlane.f32.xlu0 %v1123_v23 }
 0x26c   : > { %v1962_v33 = vmul.f32 %v1960_v26, %v1956_v25  ;;  %v1948_v34 = vmul.f32 2.0, %v1942_v27 }
 0x26d   : > { %v1961_v35 = vmul.f32 %v1959_v31, %v1955_v30  ;;  %v1947_v36 = vmul.f32 2.0, %v1941_v32  ;;  %v3306_v37 = vpop.f32.mrb[20].mxu1 }
 0x26e   : > { %3572 = vrcp.f32 %v1962_v33  ;;  %v1950_v39 = vadd.f32 0.0009, %v1948_v34  ;;  %v2138_v40 = vpop.f32.mrb[21].mxu1  ;;  %v2778_v46 = vmul.f32 %v3306_v37, %v3306_v37 }
 0x26f   : > { %3574 = vrcp.f32 %v1961_v35  ;;  %v1949_v42 = vadd.f32 0.0009, %v1947_v36  ;;  %v2777_v50 = vmul.f32 %v2138_v40, %v2138_v40 }
 0x270   : > { %v1952_v43 = vmul.f32 %v1950_v39, %v1946_v38 }
 0x271   : > { %v1951_v44 = vmul.f32 %v1949_v42, %v1945_v41  ;;  %v3320_v45 = vpop.f32.mrb[22].mxu1 }
 0x272   : > { %v2780_v47 = vmul.f32 %v3320_v45, %v3320_v45  ;;  %v2782_v48 = vmul.f32 %v3320_v45, %v3306_v37  ;;  %v2294_v49 = vpop.f32.mrb[23].mxu1 }
 0x273   : > { %v2779_v51 = vmul.f32 %v2294_v49, %v2294_v49  ;;  %v2781_v52 = vmul.f32 %v2294_v49, %v2138_v40 }
 0x274   : > { %v2800_v53 = vadd.f32 %v2780_v47, %v2778_v46  ;;  %v2790_v9 = vmul.f32 2.0, %v2782_v48 }
 0x275   : > { %v2799_v54 = vadd.f32 %v2779_v51, %v2777_v50  ;;  %v3334_v55 = vpop.f32.mrb[24].mxu1  ;;  %v2789_v14 = vmul.f32 2.0, %v2781_v52 }
 0x276   : > { %v2784_v56 = vsub.f32 %v3334_v55, %v2778_v46  ;;  %v2452_v57 = vpop.f32.mrb[25].mxu1  ;;  %v2802_v10 = vadd.f32 0.0001, %v2800_v53  ;;  %v2792_v22 = vadd.f32 0.0001, %v2790_v9 }
 0x277   : > { %v2783_v58 = vsub.f32 %v2452_v57, %v2777_v50  ;;  %v2801_v15 = vadd.f32 0.0001, %v2799_v54  ;;  %v2791_v24 = vadd.f32 0.0001, %v2789_v14 }
 0x278   : > { %v3573_v59 = vpop.eup %3572 }
 0x279   : > { %v3575_v60 = vpop.eup %3574  ;;  %v3348_v61 = vpop.f32.mrb[26].mxu1  ;;  %v1966_v62 = vmul.f32 %v3573_v59, %v1952_v43 }
 0x27a   : > { %v2786_v63 = vsub.f32 %v3348_v61, %v2780_v47  ;;  %v2610_v0 = vpop.f32.mrb[27].mxu1  ;;  %v1964_v1 = vmul.f32 %v3575_v60, %v1951_v44 }
 0x27b   : > { %v2785_v2 = vsub.f32 %v2610_v0, %v2779_v51  ;;  %v1968_v3 = vsel %vm292_vm0, %v1966_v62, 0.0 }
 0x27c   : > { %v2804_v4 = vadd.f32 %v2786_v63, %v2784_v56  ;;  %v1967_v5 = vsel %vm292_vm0, %v1964_v1, 0.0 }
 0x27d   : > { %v2803_v6 = vadd.f32 %v2785_v2, %v2783_v58  ;;  %v3362_v7 = vpop.f32.mrb[28].mxu1  ;;  %v1969_v8 = vadd.f32 %v1968_v3, %v1967_v5 }
 0x27e   : > { %v2806_v11 = vadd.f32 0.0009, %v2804_v4  ;;  %v2788_v12 = vsub.f32 %v3362_v7, %v2782_v48  ;;  %v2768_v13 = vpop.f32.mrb[29].mxu1 }
 0x27f   : > { %v2805_v16 = vadd.f32 0.0009, %v2803_v6  ;;  %v2787_v17 = vsub.f32 %v2768_v13, %v2781_v52  ;;  %1970 = vadd.xlane.f32.xlu0 %v1969_v8 }
 0x280   : > { %v2808_v18 = vmul.f32 %v2806_v11, %v2802_v10  ;;  %v2794_v19 = vmul.f32 2.0, %v2788_v12 }
 0x281   : > { %v2807_v20 = vmul.f32 %v2805_v16, %v2801_v15  ;;  %v2793_v21 = vmul.f32 2.0, %v2787_v17 }
 0x282   : > { %3576 = vrcp.f32 %v2808_v18  ;;  %v2796_v23 = vadd.f32 0.0009, %v2794_v19 }
 0x283   : > { %3578 = vrcp.f32 %v2807_v20  ;;  %v2795_v25 = vadd.f32 0.0009, %v2793_v21 }
 0x284   : > { %v2798_v26 = vmul.f32 %v2796_v23, %v2792_v22 }
 0x285   : > { %v2797_v27 = vmul.f32 %v2795_v25, %v2791_v24 }
 0x28c   : > { %v3577_v28 = vpop.eup %3576 }
 0x28d   : > { %v3579_v29 = vpop.eup %3578  ;;  %v2812_v30 = vmul.f32 %v3577_v28, %v2798_v26 }
 0x28e   : > { %v2810_v31 = vmul.f32 %v3579_v29, %v2797_v27 }
 0x28f   : > { %v2814_v32 = vsel %vm292_vm0, %v2812_v30, 0.0 }
 0x290   : > { %v2813_v33 = vsel %vm292_vm0, %v2810_v31, 0.0 }
 0x291   : > { %v2815_v34 = vadd.f32 %v2814_v32, %v2813_v33 }
 0x293   : > { %2816 = vadd.xlane.f32.xlu1 %v2815_v34 }
 0x2f8   : > { %v1125_v35 = vpop.xlane.xlu0 %1124 }
 0x2f9   : > { %v1126_v36 = vrot.slane %v1125_v35, 4 }
 0x2fb   : > { %v1127_v37 = vadd.f32 %v1126_v36, %v1125_v35 }
 0x2fd   : > { %v1128_v38 = vrot.slane %v1127_v37, 2 }
 0x2ff   : > { %v1129_v39 = vadd.f32 %v1128_v38, %v1127_v37 }
 0x301   : > { %v1130_v40 = vrot.slane %v1129_v39, 1 }
 0x303   : > { %v1131_v41 = vadd.f32 %v1130_v40, %v1129_v39 }
 0x305   : > { %3488 = vpush %v1131_v41 }
 0x30c   : > { %v1971_v42 = vpop.xlane.xlu0 %1970 }
 0x30d   : > { %v1972_v43 = vrot.slane %v1971_v42, 4 }
 0x30f   : > { %v1973_v44 = vadd.f32 %v1972_v43, %v1971_v42 }
 0x311   : > { %v1974_v45 = vrot.slane %v1973_v44, 2 }
 0x313   : > { %v1975_v46 = vadd.f32 %v1974_v45, %v1973_v44 }
 0x315   : > { %v1976_v47 = vrot.slane %v1975_v46, 1 }
 0x317   : > { %v1977_v48 = vadd.f32 %v1976_v47, %v1975_v46 }
 0x319   : > { %3490 = vpush %v1977_v48 }
 0x320   : > { %v2817_v49 = vpop.xlane.xlu1 %2816 }
 0x321   : > { %v2818_v50 = vrot.slane %v2817_v49, 4 }
 0x323   : > { %v2819_v51 = vadd.f32 %v2818_v50, %v2817_v49 }
 0x325   : > { %v2820_v52 = vrot.slane %v2819_v51, 2 }
 0x327   : > { %v2821_v53 = vadd.f32 %v2820_v52, %v2819_v51 }
 0x329   : > { %v2822_v54 = vrot.slane %v2821_v53, 1 }
 0x32b   : > { %v2823_v55 = vadd.f32 %v2822_v54, %v2821_v53 }
 0x32d   : > { %3492 = vpush %v2823_v55 }
 0x336   : > { %s3489_s21 = spop %3488 }
 0x337   : > { %s1135_s27 = smul.f32 0.00390625, %s3489_s21 }
 0x339   : > { %v1136_v56 = vstv %s1135_s27 }
 0x33a   : > { %1138 = vst.msk [vmem:[%s283_s5] sm:$0x1] %vm1137_vm1, %v1136_v56 }
 0x34a   : > { %s3491_s25 = spop %3490 }
 0x34b   : > { %s1981_s24 = smul.f32 0.00390625, %s3491_s25 }
 0x34d   : > { %v1982_v57 = vstv %s1981_s24 }
 0x34e   : > { %1984 = vst.msk [vmem:[%s283_s5] sm:$0x1] %vm1983_vm2, %v1982_v57 }
 0x35e   : > { %s3493_s28 = spop %3492 }
 0x35f   : > { %s2827_s30 = smul.f32 0.00390625, %s3493_s28 }
 0x361   : > { %v2828_v58 = vstv %s2827_s30 }
 0x362   : > { %2830 = vst.msk [vmem:[%s283_s5] sm:$0x1] %vm2829_vm3, %v2828_v58 }
 0x363   : > { %3709 = shalt.err (!%p3706_p7)
}
 0x364   : > { %s3710_s0 = scalar_lea.hbm %s4210_s6, 16  ;;  %s3714_s27 = scalar_lea.hbm %s4258_s4, 32 }
 0x365   : > { %p3711_p9 = scmp.ne.s32.totalorder %s4210_s6, %s3710_s0  ;;  %p3715_p11 = scmp.lt.u32.totalorder %s4210_s6, %s4258_s4 }
 0x366   : > { %p3716_p2 = scmp.lt.u32.totalorder %s3714_s27, %s3710_s0  ;;  %p3718_p1 = scmp.lt.u32.totalorder %s3710_s0, %s4210_s6 }
 0x367   : > { %p3712_p0 = pnand %p3711_p9, %p4279_p13 }
 0x368   : > { %p3717_p12 = por %p3716_p2, %p3715_p11 }
 0x369   : > { %p3713_p8 = pneg %p3712_p0 }
 0x36a   : > { %p3719_p6 = por %p3718_p1, %p3717_p12 }
 0x36c   : > { %p3720_p10 = pnand %p3719_p6, %p3713_p8 }
 0x36e   : > { %3723 = shalt.err (!%p3720_p10)
}
 0x36f   : > { %3506 = dma.vmem_to_hbm [thread:$0]  (%p4279_p13), %s4212_s9, 16, %s4210_s6, %s2832_s7  }
 0x370 PF: > { %s2856_s24 = sand.u32 1, %s3762_s15   ;;  %p4280_p4 = scmp.ne.s32.totalorder %s4265_s22, 0 }
 0x371   : > { %p4281_p5 = scmp.ge.s32.totalorder %s3774_s18, 2  ;;  %s2857_s29 = scalar_lea.sflag [#allocation4], %s2856_s24 }
 0x373   : > { %p3523_p3 = pnand %p4281_p5, %p4280_p4 }
 0x375   : > { %3757 = dma.done.wait (!%p3523_p3), %s2857_s29, 16  }
 0x376   : > { %3759 = vsyncadd (!%p3523_p3), %s2857_s29, 4294967280  ;;  %p21_p7 = scmp.ge.s32.totalorder %s3924_s26, 4   ;;  %s4282_s15 = smov %s3766_s16 }
 0x377   : > { %s4283_s16 = smov %s3770_s17  ;;  %s4284_s17 = smov %s3940_s14 }
 0x378   : > { %s4285_s18 = smov %s3924_s26  ;;  %23 = sbr.rel (!%p21_p7) target bundleno = 10 (0xa), region = 106 }
 0x37f   :  { %2861 = vsyncpa [#allocation3], 1 }
 0x380   :  { %2863 = vsyncpa [#allocation3 + $0x1], 1 }
 0x381   :  { %2864 = vsyncpa [#allocation6], 1 }
 0x382   :  { %2866 = vsyncpa [#allocation6 + $0x1], 1 }
 0x383   :  { %2867 = vsyncpa [#allocation9], 1 }
 0x384   :  { %2868 = vsyncpa [#allocation4], 1 }
 0x385   :  { %2870 = vsyncpa [#allocation4 + $0x1], 1 }

</bundles_post_ra>
